<compile_context>
chip_gen: v5e
topology: v5e:2x2
jax: 0.10.0
libtpu: 0.0.40
codegen_flags: <defaults>
</compile_context>

<pallas_src>
import functools
import math

import jax
import jax.numpy as jnp
from jax.experimental import pallas as pl
from jax.experimental.pallas import tpu as pltpu


def _fourier_kernel(x_ref, w_ref, o_ref):
    # z = x_tile @ (W * scale)^T  (scale already folded into w in the wrapper)
    z = jnp.dot(x_ref[...], w_ref[...], preferred_element_type=jnp.float32)
    # Build the full (TM, 2*out_features) tile in-register and issue a single
    # store (lane-dense write of the whole tile) rather than two partial stores.
    o_ref[...] = jnp.concatenate([jnp.sin(z), jnp.cos(z)], axis=-1).astype(o_ref.dtype)


def _choose_tm(m, in_features, out_features, out_bytes, vmem_budget_bytes=8 * 1024 * 1024):
    """Pick a row-tile size TM that keeps double-buffered tiles well under VMEM."""
    # Per row: input tile (f32) + output tile, each double-buffered by Pallas.
    per_row = 2 * (in_features * 4 + 2 * out_features * out_bytes)
    tm = vmem_budget_bytes // max(per_row, 1)
    tm = max(8, min(int(tm), 2048))
    tm = (tm // 8) * 8  # keep sublane alignment
    m8 = ((m + 7) // 8) * 8
    return max(8, min(tm, m8))


def fourier_layer(x, weight, weight_scale, out_dtype=None):
    """x: (..., in_features); weight: (out_features, in_features)."""
    *batch_dims, in_features = x.shape
    out_features = weight.shape[0]
    m = int(math.prod(batch_dims)) if batch_dims else 1
    out_dtype = x.dtype if out_dtype is None else out_dtype

    x2d = x.reshape(m, in_features)
    # Fold scale and transpose the weight once (grid-invariant glue in plain JAX).
    w_t = (weight.astype(jnp.float32) * weight_scale).T  # (in_features, out_features)

    out_bytes = jnp.dtype(out_dtype).itemsize
    tm = _choose_tm(m, in_features, out_features, out_bytes)

    # Pad M up to a multiple of TM so every grid step sees a full tile; padded
    # rows are computed (cheap) and sliced off afterwards.
    num_tiles = pl.cdiv(m, tm)
    m_pad = num_tiles * tm
    if m_pad != m:
        x2d = jnp.pad(x2d, ((0, m_pad - m), (0, 0)))

    # Actual VMEM usage estimate + headroom (stays well under v7x's budget).
    vmem_usage = 2 * tm * (in_features * 4 + 2 * out_features * out_bytes) + \
        in_features * out_features * 4
    vmem_limit = min(32 * 1024 * 1024, max(4 * vmem_usage, 4 * 1024 * 1024))

    out2d = pl.pallas_call(
        _fourier_kernel,
        out_shape=jax.ShapeDtypeStruct((m_pad, 2 * out_features), out_dtype),
        grid_spec=pltpu.PrefetchScalarGridSpec(
            num_scalar_prefetch=0,
            grid=(num_tiles,),
            in_specs=[
                pl.BlockSpec((tm, in_features), lambda i: (i, 0)),
                # Weight: constant block index -> resident in VMEM across steps.
                pl.BlockSpec((in_features, out_features), lambda i: (0, 0)),
            ],
            out_specs=pl.BlockSpec((tm, 2 * out_features), lambda i: (i, 0)),
        ),
        compiler_params=pltpu.CompilerParams(
            dimension_semantics=("parallel",),
            vmem_limit_bytes=int(vmem_limit),
        ),
    )(x2d, w_t)

    if m_pad != m:
        out2d = out2d[:m]
    return out2d.reshape(*batch_dims, 2 * out_features)


def kaiming_uniform_like_torch(key, out_features, in_features, a=math.sqrt(5)):
    # Matches nn.init.kaiming_uniform_(W, a=sqrt(5)) distribution parameters:
    # gain = sqrt(2 / (1 + a^2)), bound = sqrt(3) * gain / sqrt(fan_in)
    gain = math.sqrt(2.0 / (1.0 + a * a))
    bound = math.sqrt(3.0) * gain / math.sqrt(in_features)
    return jax.random.uniform(
        key, (out_features, in_features), jnp.float32, minval=-bound, maxval=bound
    )


if __name__ == "__main__":
    key = jax.random.PRNGKey(0)
    k_x, k_w, k_x2 = jax.random.split(key, 3)

    # Small shapes consistent with an INR-style coordinate input:
    # batch=2, seq=8 coordinate points, in_features=4, out_features=32
    batch, seq, in_features, out_features = 2, 8, 4, 32
    weight_scale = 10.0

    x = jax.random.normal(k_x, (batch, seq, in_features), jnp.float32)
    weight = kaiming_uniform_like_torch(k_w, out_features, in_features)

    out = fourier_layer(x, weight, weight_scale)
    out = jax.block_until_ready(out)

    # Pure-JAX reference check of the forward semantics.
    z_ref = x @ (weight * weight_scale).T
    ref = jnp.concatenate([jnp.sin(z_ref), jnp.cos(z_ref)], axis=-1)
    assert out.shape == (batch, seq, 2 * out_features)
    assert jnp.allclose(out, ref, atol=1e-5, rtol=1e-5)

    # Ragged-M case (exercises the row-tiling + pad/slice path).
    x2 = jax.random.normal(k_x2, (3, 37, in_features), jnp.float32)
    out2 = jax.block_until_ready(fourier_layer(x2, weight, weight_scale))
    z2 = x2 @ (weight * weight_scale).T
    ref2 = jnp.concatenate([jnp.sin(z2), jnp.cos(z2)], axis=-1)
    assert out2.shape == (3, 37, 2 * out_features)
    assert jnp.allclose(out2, ref2, atol=1e-5, rtol=1e-5)

    print("KERNEL_OK")
</pallas_src>

<mosaic_0001>
module attributes {stable_mosaic.version = 11 : i64} {
  func.func @_fourier_kernel(%arg0: i32, %arg1: memref<16x4xf32, #tpu.memory_space<vmem>>, %arg2: memref<4x32xf32, #tpu.memory_space<vmem>>, %arg3: memref<16x64xf32, #tpu.memory_space<vmem>>) attributes {dimension_semantics = [#tpu.dimension_semantics<parallel>], iteration_bounds = array<i64: 1>, scalar_prefetch = 0 : i64, scratch_operands = 0 : i64, tpu.core_type = #tpu.core_type<tc>, window_params = [{transform_indices = @transform_0, window_bounds = array<i64: 16, 4>}, {pipeline_mode = #tpu.pipeline_mode<synchronous>, transform_indices = @transform_1, window_bounds = array<i64: 4, 32>}, {transform_indices = @transform_2, window_bounds = array<i64: 16, 64>}]} {
    %c0 = arith.constant 0 : index
    %c0_0 = arith.constant 0 : index
    %0 = vector.load %arg1[%c0, %c0_0] : memref<16x4xf32, #tpu.memory_space<vmem>>, vector<16x4xf32>
    %c0_1 = arith.constant 0 : index
    %c0_2 = arith.constant 0 : index
    %1 = vector.load %arg2[%c0_1, %c0_2] : memref<4x32xf32, #tpu.memory_space<vmem>>, vector<4x32xf32>
    %cst = arith.constant dense<0.000000e+00> : vector<16x32xf32>
    %2 = tpu.matmul %0, %1, %cst {dimension_numbers = #tpu.dot_dimension_numbers<[1], [0], [0], [1], [0, 0, 1, 1], [], []>} : vector<16x4xf32>, vector<4x32xf32>, vector<16x32xf32> -> vector<16x32xf32>
    %3 = math.sin %2 : vector<16x32xf32>
    %4 = math.cos %2 : vector<16x32xf32>
    %5 = tpu.concatenate %3, %4 in 1 : vector<16x32xf32>, vector<16x32xf32> -> vector<16x64xf32>
    %c0_3 = arith.constant 0 : index
    %c0_4 = arith.constant 0 : index
    %6 = vector.load %arg3[%c0_3, %c0_4] : memref<16x64xf32, #tpu.memory_space<vmem>>, vector<16x64xf32>
    tpu.vector_store %arg3[%c0_3, %c0_4], %5 {strides = array<i32>} : memref<16x64xf32, #tpu.memory_space<vmem>>, vector<16x64xf32>,
    return
  }
  func.func @transform_0(%arg0: i32) -> (i32, i32) {
    %c0_i32 = arith.constant 0 : i32
    %c0_i32_0 = arith.constant 0 : i32
    return %arg0, %c0_i32 : i32, i32
  }
  func.func @transform_1(%arg0: i32) -> (i32, i32) {
    %c0_i32 = arith.constant 0 : i32
    %c0_i32_0 = arith.constant 0 : i32
    %c0_i32_1 = arith.constant 0 : i32
    return %c0_i32, %c0_i32_0 : i32, i32
  }
  func.func @transform_2(%arg0: i32) -> (i32, i32) {
    %c0_i32 = arith.constant 0 : i32
    %c0_i32_0 = arith.constant 0 : i32
    return %arg0, %c0_i32 : i32, i32
  }
}

</mosaic_0001>

<bundles_post_ra>
// kernel: tpu_custom_call.1
= control target key start
LH: loop header
LB: loop body
LE: loop exit
PB: predicated region body
PF: predicated region fallthrough
CT: control target
= control target key end

     0   :  { %vm22_vm0 = vcmask 1043456   ;;  %vm15_vm1 = vcmask 31744   ;;  %s966_s0 = inlined_call_operand.vmem [shape: f32[16,4], index: 0, kind: input, shape index: {}]   ;;  %s967_s1 = inlined_call_operand.vmem [shape: f32[4,32], index: 1, kind: input, shape index: {}]   ;;  %s968_s2 = inlined_call_operand.hbm [shape: f32[16,64], index: 2, kind: output, shape index: {}]  }
   0x1   :  { %v14_v0 = vld [vmem:[%s967_s1] sm:$0xf]  ;;  %v13_v2 = vld [vmem:[%s966_s0 + $0x8] sm:$0xff] }
   0x2   :  { %v12_v1 = vld [vmem:[%s966_s0] sm:$0xff]  ;;  %699 = vmatpush.msk.msra.mxu0 %vm22_vm0, %v14_v0  ;;  %714 = vmatpush.msk.msra.mxu1 %vm22_vm0, %v14_v0 }
   0x3   :  { %7 = vsyncpa [#allocation3], 0  ;;  %700 = vmatmul.msk.f32.vlgmr.msra.gmra.mxu0 %vm15_vm1, %v12_v1  ;;  %701 = vmatmul.msk.f32.vlgmr.msra.gmra.mxu1 %vm15_vm1, %v13_v2  ;;  %v752_v28 = vmov 683565275   ;;  %v753_v30 = vmov 2475754826  }
   0x4   :  { %v754_v34 = vmov 2131351028   ;;  %v755_v37 = vmov 2102212464   ;;  %v756_v40 = vmov 920167782  }
   0x5   :  { %v757_v43 = vmov 1326507024   ;;  %s759_s0 = smov 32   ;;  %s760_s1 = smov [#allocation2]  }
   0x6   :  { %s685_s15 = sshll.u32 %s760_s1, 4  ;;  %s687_s18 = sshll.u32 %s968_s2, 4  ;;  %s686_s15 = int_to_ptr.vmem [resolvable:$true] %s685_s15  ;;  %s688_s18 = int_to_ptr.hbm [resolvable:$true] %s687_s18 }
   0x7   :  { %s761_s19 = smov 128   ;;  %s762_s20 = smov 8  }
  0x80   :  { %v787_v3 = vpop.f32.mrf.mxu0  ;;  %v789_v4 = vpop.f32.mrf.mxu1 }
  0x81   :  { %v49_v5 = vand.u32 2147483647, %v787_v3  ;;  %v52_v6 = vand.u32 2139095040, %v787_v3  ;;  %v204_v7 = vand.u32 2147483647, %v789_v4  ;;  %v207_v8 = vand.u32 2139095040, %v789_v4 }
  0x83   :  { %v53_v9 = vshrl.u32 %v52_v6, 23  ;;  %v56_v10 = vand.u32 8388607, %v49_v5  ;;  %v208_v11 = vshrl.u32 %v207_v8, 23  ;;  %v211_v14 = vand.u32 8388607, %v204_v7 }
  0x85   :  { %v702_v12 = vadd.s32 4294967169, %v53_v9  ;;  %v57_v13 = vor.u32 8388608, %v56_v10  ;;  %v705_v15 = vadd.s32 4294967169, %v208_v11  ;;  %v212_v19 = vor.u32 8388608, %v211_v14 }
  0x87   :  { %v59_v16 = vadd.s32 1, %v702_v12  ;;  %v214_v17 = vadd.s32 1, %v705_v15  ;;  %v799_v18 = vshll.u32 %v57_v13, 8  ;;  %v806_v26 = vshll.u32 %v212_v19, 8 }
  0x89   :  { %vm60_vm2 = vcmp.gt.s32.totalorder %v59_v16, 0  ;;  %vm215_vm3 = vcmp.gt.s32.totalorder %v214_v17, 0  ;;  %v802_v24 = vand.u32 65535, %v799_v18  ;;  %v99_v32 = vshrl.u32 %v799_v18, 16 }
  0x8a   :  { %v61_v20 = vsel %vm60_vm2, %v59_v16, 0  ;;  %v216_v22 = vsel %vm215_vm3, %v214_v17, 0 }
  0x8b   :  { %v63_v21 = vand.u32 31, %v61_v20  ;;  %v804_v25 = vand.u32 31, %v216_v22  ;;  %v808_v27 = vshrl.u32 %v61_v20, 5  ;;  %v844_v11 = vshrl.u32 %v216_v22, 5 }
  0x8d   :  { %v64_v23 = vsub.s32 32, %v63_v21  ;;  %v66_v29 = vshll.u32 %v752_v28, %v63_v21  ;;  %v69_v31 = vshll.u32 %v753_v30, %v63_v21  ;;  %v72_v36 = vshll.u32 %v754_v34, %v63_v21 }
  0x8e   :  { %v75_v39 = vshll.u32 %v755_v37, %v63_v21  ;;  %v78_v42 = vshll.u32 %v756_v40, %v63_v21  ;;  %v816_v48 = vsub.s32 32, %v804_v25  ;;  %vm81_vm4 = vcmp.lt.s32.totalorder %v808_v27, 1 }
  0x8f   :  { %v67_v33 = vshrl.u32 %v753_v30, %v64_v23  ;;  %v70_v35 = vshrl.u32 %v754_v34, %v64_v23  ;;  %v73_v38 = vshrl.u32 %v755_v37, %v64_v23  ;;  %v76_v41 = vshrl.u32 %v756_v40, %v64_v23 }
  0x90   :  { %v79_v44 = vshrl.u32 %v757_v43, %v64_v23  ;;  %vm82_vm5 = vcmp.lt.s32.totalorder %v808_v27, 2  ;;  %vm83_vm6 = vcmp.lt.s32.totalorder %v808_v27, 3  ;;  %vm84_vm7 = vcmp.lt.s32.totalorder %v808_v27, 4 }
  0x91   :  { %v68_v45 = vor.u32 %v67_v33, %v66_v29  ;;  %v71_v46 = vor.u32 %v70_v35, %v69_v31  ;;  %v74_v47 = vor.u32 %v73_v38, %v72_v36  ;;  %v77_v49 = vor.u32 %v76_v41, %v75_v39 }
  0x92   :  { %v80_v50 = vor.u32 %v79_v44, %v78_v42  ;;  %v221_v55 = vshll.u32 %v752_v28, %v804_v25  ;;  %v224_v56 = vshll.u32 %v753_v30, %v804_v25  ;;  %v222_v60 = vshrl.u32 %v753_v30, %v816_v48 }
  0x93   :  { %v89_v51 = vsel %vm81_vm4, %v68_v45, %v71_v46  ;;  %v93_v52 = vsel %vm81_vm4, %v71_v46, %v74_v47  ;;  %v90_v53 = vsel %vm84_vm7, %v77_v49, 920167782  ;;  %v86_v57 = vsel %vm84_vm7, %v74_v47, 2102212464 }
  0x94   :  { %v94_v54 = vsel %vm84_vm7, %v80_v50, 1326507024  ;;  %v91_v58 = vsel %vm83_vm6, %v74_v47, %v90_v53  ;;  %v65_v61 = vshrl.u32 %v752_v28, %v64_v23  ;;  %v225_v0 = vshrl.u32 %v754_v34, %v816_v48 }
  0x95   :  { %v95_v59 = vsel %vm83_vm6, %v77_v49, %v94_v54  ;;  %v92_v62 = vsel %vm82_vm5, %v89_v51, %v91_v58  ;;  %v87_v10 = vsel %vm83_vm6, %v71_v46, %v86_v57  ;;  %v846_v12 = vor.u32 %v222_v60, %v221_v55 }
  0x96   :  { %v96_v63 = vsel %vm82_vm5, %v93_v52, %v95_v59  ;;  %v122_v6 = vand.u32 65535, %v92_v62  ;;  %v123_v8 = vshrl.u32 %v92_v62, 16  ;;  %v85_v9 = vsel %vm81_vm4, %v65_v61, %v68_v45 }
  0x97   :  { %v100_v1 = vand.u32 65535, %v96_v63  ;;  %v101_v2 = vshrl.u32 %v96_v63, 16  ;;  %v849_v15 = vor.u32 %v225_v0, %v224_v56  ;;  %v227_v16 = vshll.u32 %v754_v34, %v804_v25 }
  0x98   :  { %v125_v19 = vmul.u32 %v123_v8, %v802_v24  ;;  %v126_v20 = vmul.u32 %v122_v6, %v99_v32  ;;  %v228_v21 = vshrl.u32 %v755_v37, %v816_v48  ;;  %v124_v22 = vmul.u32 %v122_v6, %v802_v24 }
  0x99   :  { %v103_v13 = vmul.u32 %v101_v2, %v802_v24  ;;  %v104_v14 = vmul.u32 %v100_v1, %v99_v32  ;;  %v102_v17 = vmul.u32 %v100_v1, %v802_v24  ;;  %v105_v23 = vmul.u32 %v101_v2, %v99_v32 }
  0x9a   :  { %v127_v30 = vmul.u32 %v123_v8, %v99_v32  ;;  %v128_v36 = vshll.u32 %v125_v19, 16  ;;  %v130_v39 = vshll.u32 %v126_v20, 16  ;;  %v230_v34 = vshll.u32 %v755_v37, %v804_v25 }
  0x9b   :  { %v106_v29 = vshll.u32 %v103_v13, 16  ;;  %v107_v31 = vshrl.u32 %v103_v13, 16  ;;  %v108_v33 = vshll.u32 %v104_v14, 16  ;;  %v109_v35 = vshrl.u32 %v104_v14, 16 }
  0x9c   :  { %v758_v41 = vmov 0   ;;  %vm132_vm9 = vc.u32 %v124_v22, %v128_v36  ;;  %v134_v44 = vadd.s32 %v128_v36, %v124_v22  ;;  %v231_v45 = vshrl.u32 %v756_v40, %v816_v48 }
  0x9d   :  { %vm110_vm8 = vc.u32 %v102_v17, %v106_v29  ;;  %v112_v38 = vadd.s32 %v106_v29, %v102_v17  ;;  %v133_v24 = vsel %vm132_vm9, 1, %v758_v41  ;;  %v233_v32 = vshll.u32 %v756_v40, %v804_v25 }
  0x9e   :  { %v111_v42 = vsel %vm110_vm8, 1, %v758_v41  ;;  %v135_v49 = vadd.s32 %v133_v24, %v127_v30  ;;  %vm136_vm11 = vc.u32 %v134_v44, %v130_v39  ;;  %v229_v37 = vor.u32 %v228_v21, %v227_v16 }
  0x9f   :  { %v113_v46 = vadd.s32 %v111_v42, %v105_v23  ;;  %vm114_vm10 = vc.u32 %v112_v38, %v108_v33  ;;  %v137_v51 = vsel %vm136_vm11, 1, %v758_v41  ;;  %v232_v52 = vor.u32 %v231_v45, %v230_v34 }
  0xa0   :  { %v115_v47 = vsel %vm114_vm10, 1, %v758_v41  ;;  %v234_v53 = vshrl.u32 %v757_v43, %v816_v48  ;;  %v129_v54 = vshrl.u32 %v125_v19, 16  ;;  %v139_v55 = vadd.s32 %v137_v51, %v135_v49 }
  0xa1   :  { %v117_v50 = vadd.s32 %v115_v47, %v113_v46  ;;  %vm236_vm12 = vcmp.lt.s32.totalorder %v844_v11, 1  ;;  %vm238_vm13 = vcmp.lt.s32.totalorder %v844_v11, 3  ;;  %vm237_vm14 = vcmp.lt.s32.totalorder %v844_v11, 2 }
  0xa2   :  { %v235_v25 = vor.u32 %v234_v53, %v233_v32  ;;  %vm239_vm15 = vcmp.lt.s32.totalorder %v844_v11, 4  ;;  %v131_v40 = vshrl.u32 %v126_v20, 16  ;;  %v140_v57 = vadd.s32 %v139_v55, %v129_v54 }
  0xa3   :  { %v118_v56 = vadd.s32 %v117_v50, %v107_v31  ;;  %v244_v58 = vsel %vm236_vm12, %v846_v12, %v849_v15  ;;  %v245_v43 = vsel %vm239_vm15, %v232_v52, 920167782  ;;  %v879_v60 = vadd.s32 %v134_v44, %v130_v39 }
  0xa4   :  { %v246_v61 = vsel %vm238_vm13, %v229_v37, %v245_v43  ;;  %v248_v62 = vsel %vm236_vm12, %v849_v15, %v229_v37  ;;  %v88_v63 = vsel %vm82_vm5, %v85_v9, %v87_v10  ;;  %v141_v0 = vadd.s32 %v140_v57, %v131_v40 }
  0xa5   :  { %v877_v59 = vadd.s32 %v118_v56, %v109_v35  ;;  %v247_v1 = vsel %vm237_vm14, %v244_v58, %v246_v61  ;;  %v249_v2 = vsel %vm239_vm15, %v235_v25, 1326507024  ;;  %v253_v8 = vand.u32 65535, %v806_v26 }
  0xa6   :  { %v250_v6 = vsel %vm238_vm13, %v232_v52, %v249_v2  ;;  %v277_v13 = vand.u32 65535, %v247_v1  ;;  %v145_v14 = vadd.s32 1, %v141_v0  ;;  %v254_v9 = vshrl.u32 %v806_v26, 16 }
  0xa7   :  { %vm144_vm0 = vc.u32 %v877_v59, %v879_v60  ;;  %v251_v27 = vsel %vm237_vm14, %v248_v62, %v250_v6  ;;  %v278_v10 = vshrl.u32 %v247_v1, 16  ;;  %v142_v16 = vmul.u32 %v799_v18, %v88_v63 }
  0xa8   :  { %v255_v17 = vand.u32 65535, %v251_v27  ;;  %v256_v19 = vshrl.u32 %v251_v27, 16  ;;  %v146_v20 = vsel %vm144_vm0, %v145_v14, %v141_v0  ;;  %v281_v23 = vmul.u32 %v277_v13, %v254_v9 }
  0xa9   :  { %v280_v21 = vmul.u32 %v278_v10, %v253_v8  ;;  %v147_v29 = vadd.s32 %v146_v20, %v142_v16  ;;  %v279_v31 = vmul.u32 %v277_v13, %v253_v8  ;;  %v282_v33 = vmul.u32 %v278_v10, %v254_v9 }
  0xaa   :  { %v258_v22 = vmul.u32 %v256_v19, %v253_v8  ;;  %v259_v30 = vmul.u32 %v255_v17, %v254_v9  ;;  %v257_v38 = vmul.u32 %v255_v17, %v253_v8  ;;  %v260_v39 = vmul.u32 %v256_v19, %v254_v9 }
  0xab   :  { %v283_v35 = vshll.u32 %v280_v21, 16  ;;  %v148_v36 = vadd.s32 536870912, %v147_v29  ;;  %v285_v44 = vshll.u32 %v281_v23, 16  ;;  %v220_v32 = vshrl.u32 %v752_v28, %v816_v48 }
  0xac   :  { %v261_v34 = vshll.u32 %v258_v22, 16  ;;  %v263_v42 = vshll.u32 %v259_v30, 16  ;;  %v241_v51 = vsel %vm239_vm15, %v229_v37, 2102212464  ;;  %v262_v56 = vshrl.u32 %v258_v22, 16 }
  0xad   :  { %vm287_vm1 = vc.u32 %v279_v31, %v283_v35  ;;  %v289_v45 = vadd.s32 %v283_v35, %v279_v31  ;;  %v901_v18 = vshrl.u32 %v148_v36, 30  ;;  %v240_v28 = vsel %vm236_vm12, %v220_v32, %v846_v12 }
  0xae   :  { %vm265_vm2 = vc.u32 %v257_v38, %v261_v34  ;;  %v267_v46 = vadd.s32 %v261_v34, %v257_v38  ;;  %v288_v24 = vsel %vm287_vm1, 1, %v758_v41  ;;  %v242_v48 = vsel %vm238_vm13, %v849_v15, %v241_v51 }
  0xaf   :  { %v266_v47 = vsel %vm265_vm2, 1, %v758_v41  ;;  %v290_v49 = vadd.s32 %v288_v24, %v282_v33  ;;  %vm291_vm3 = vc.u32 %v289_v45, %v285_v44  ;;  %v150_v50 = vshll.u32 %v901_v18, 30 }
  0xb0   :  { %v268_v52 = vadd.s32 %v266_v47, %v260_v39  ;;  %vm269_vm4 = vc.u32 %v267_v46, %v263_v42  ;;  %v292_v54 = vsel %vm291_vm3, 1, %v758_v41  ;;  %v284_v57 = vshrl.u32 %v280_v21, 16 }
  0xb1   :  { %v270_v53 = vsel %vm269_vm4, 1, %v758_v41  ;;  %v151_v55 = vsub.s32 %v147_v29, %v150_v50  ;;  %v294_v40 = vadd.s32 %v292_v54, %v290_v49  ;;  %v264_v58 = vshrl.u32 %v259_v30, 16 }
  0xb2   :  { %v272_v25 = vadd.s32 %v270_v53, %v268_v52  ;;  %v286_v61 = vshrl.u32 %v281_v23, 16  ;;  %v293_v0 = vadd.s32 %v289_v45, %v285_v44  ;;  %v243_v2 = vsel %vm237_vm14, %v240_v28, %v242_v48 }
  0xb3   :  { %vm152_vm5 = vcmp.lt.s32.totalorder %v151_v55, 0  ;;  %v153_v37 = vsub.s32 0, %v151_v55  ;;  %v295_v62 = vadd.s32 %v294_v40, %v284_v57  ;;  %v297_v15 = vmul.u32 %v806_v26, %v243_v2 }
  0xb4   :  { %v273_v43 = vadd.s32 %v272_v25, %v262_v56  ;;  %v143_v9 = vadd.s32 %v879_v60, %v877_v59  ;;  %vm51_vm9 = vcmp.lt.s32.totalorder %v787_v3, 0  ;;  %v173_v39 = vsub.s32 4, %v901_v18 }
  0xb5   :  { %v154_v41 = vsel %vm152_vm5, %v153_v37, %v151_v55  ;;  %v296_v6 = vadd.s32 %v295_v62, %v286_v61  ;;  %vm930_vm10 = vcmp.le.f32.partialorder %v49_v5, 0.7853982  ;;  %vm942_vm12 = vcmp.le.f32.partialorder %v204_v7, 0.7853982 }
  0xb6   :  { %v274_v63 = vadd.s32 %v273_v43, %v264_v58  ;;  %v155_v1 = vclz %v154_v41  ;;  %v174_v24 = vsel %vm51_vm9, %v173_v39, %v901_v18  ;;  %vm206_vm13 = vcmp.lt.s32.totalorder %v789_v4, 0 }
  0xb7   :  { %v300_v8 = vadd.s32 1, %v296_v6  ;;  %v176_v56 = vsel %vm930_vm10, 0, %v174_v24  ;;  %vm192_vm4 = vweird.f32 %v787_v3 }
  0xb8   :  { %vm299_vm6 = vc.u32 %v274_v63, %v293_v0  ;;  %v703_v12 = vadd.s32 4294967294, %v155_v1  ;;  %v298_v49 = vadd.s32 %v293_v0, %v274_v63  ;;  %v193_v18 = vadd.s32 3, %v176_v56 }
  0xb9   :  { %v301_v13 = vsel %vm299_vm6, %v300_v8, %v296_v6  ;;  %v503_v0 = vand.u32 3, %v176_v56 }
  0xba   :  { %vm704_vm7 = vcmp.lt.s32.totalorder %v703_v12, 0  ;;  %v302_v27 = vadd.s32 %v301_v13, %v297_v15  ;;  %v194_v6 = vand.u32 3, %v193_v18 }
  0xbb   :  { %v158_v14 = vsel %vm704_vm7, 0, %v703_v12  ;;  %vm504_vm14 = vcmp.lt.s32.totalorder %v503_v0, 2  ;;  %vm505_vm15 = vcmp.eq.s32.totalorder %v503_v0, 0  ;;  %vm508_vm3 = vcmp.eq.s32.totalorder %v503_v0, 2 }
  0xbc   :  { %v159_v10 = vsub.s32 32, %v158_v14  ;;  %v163_v16 = vsub.s32 4294967266, %v158_v14  ;;  %v303_v17 = vadd.s32 536870912, %v302_v27  ;;  %v160_v19 = vshll.u32 %v151_v55, %v158_v14 }
  0xbd   :  { %vm195_vm0 = vcmp.lt.s32.totalorder %v194_v6, 2  ;;  %vm199_vm1 = vcmp.eq.s32.totalorder %v194_v6, 2  ;;  %vm196_vm2 = vcmp.eq.s32.totalorder %v194_v6, 0 }
  0xbe   :  { %v161_v20 = vshrl.u32 %v143_v9, %v159_v10  ;;  %v164_v11 = vadd.s32 127, %v163_v16  ;;  %v923_v21 = vshrl.u32 %v303_v17, 30 }
  0xc0   :  { %v162_v23 = vor.u32 %v161_v20, %v160_v19  ;;  %v165_v29 = vshll.u32 %v164_v11, 23  ;;  %v305_v22 = vshll.u32 %v923_v21, 30  ;;  %v328_v14 = vsub.s32 4, %v923_v21 }
  0xc2   :  { %v166_v26 = vor.u32 4788187, %v165_v29  ;;  %v306_v30 = vsub.s32 %v302_v27, %v305_v22  ;;  %v169_v33 = vcvt.s32.f32 %v162_v23  ;;  %v329_v23 = vsel %vm206_vm13, %v328_v14, %v923_v21 }
  0xc4   :  { %v167_v31 = vand.u32 2147483647, %v166_v26  ;;  %vm307_vm8 = vcmp.lt.s32.totalorder %v306_v30, 0  ;;  %v308_v35 = vsub.s32 0, %v306_v30 }
  0xc6   :  { %v170_v36 = vmul.f32 %v169_v33, %v167_v31  ;;  %v309_v59 = vsel %vm307_vm8, %v308_v35, %v306_v30  ;;  %v331_v35 = vsel %vm942_vm12, 0, %v329_v23 }
  0xc7   :  { %v310_v38 = vclz %v309_v59  ;;  %v348_v21 = vadd.s32 3, %v331_v35  ;;  %v657_v24 = vand.u32 3, %v331_v35 }
  0xc8   :  { %v171_v60 = vxor.u32 2147483648, %v170_v36 }
  0xc9   :  { %v706_v44 = vadd.s32 4294967294, %v310_v38  ;;  %vm658_vm7 = vcmp.lt.s32.totalorder %v657_v24, 2  ;;  %vm659_vm8 = vcmp.eq.s32.totalorder %v657_v24, 0 }
  0xca   :  { %v172_v42 = vsel %vm51_vm9, %v171_v60, %v170_v36  ;;  %vm662_vm9 = vcmp.eq.s32.totalorder %v657_v24, 2 }
  0xcb   :  { %v175_v45 = vsel %vm930_vm10, %v787_v3, %v172_v42  ;;  %vm707_vm11 = vcmp.lt.s32.totalorder %v706_v44, 0 }
  0xcc   :  { %v177_v46 = vmul.f32 %v175_v45, %v175_v45  ;;  %v313_v32 = vsel %vm707_vm11, 0, %v706_v44  ;;  %v349_v44 = vand.u32 3, %v348_v21  ;;  %vm347_vm11 = vweird.f32 %v789_v4 }
  0xcd   :  { %v314_v50 = vsub.s32 32, %v313_v32  ;;  %v318_v51 = vsub.s32 4294967266, %v313_v32  ;;  %v315_v53 = vshll.u32 %v306_v30, %v313_v32 }
  0xce   :  { %v185_v47 = vmul.f32 -0.00019511016, %v177_v46  ;;  %v178_v52 = vmul.f32 -0.001358992, %v177_v46  ;;  %vm354_vm5 = vcmp.eq.s32.totalorder %v349_v44, 2  ;;  %vm351_vm6 = vcmp.eq.s32.totalorder %v349_v44, 0 }
  0xcf   :  { %v316_v54 = vshrl.u32 %v298_v49, %v314_v50  ;;  %v319_v55 = vadd.s32 127, %v318_v51  ;;  %vm350_vm10 = vcmp.lt.s32.totalorder %v349_v44, 2 }
  0xd0   :  { %v186_v5 = vadd.f32 0.008332121, %v185_v47  ;;  %v179_v25 = vadd.f32 0.041655596, %v178_v52 }
  0xd1   :  { %v317_v28 = vor.u32 %v316_v54, %v315_v53  ;;  %v320_v48 = vshll.u32 %v319_v55, 23 }
  0xd2   :  { %v187_v40 = vmul.f32 %v186_v5, %v177_v46  ;;  %v180_v57 = vmul.f32 %v179_v25, %v177_v46 }
  0xd3   :  { %v321_v58 = vor.u32 4788187, %v320_v48  ;;  %v324_v41 = vcvt.s32.f32 %v317_v28 }
  0xd4   :  { %v188_v37 = vadd.f32 -0.16666654, %v187_v40  ;;  %v181_v43 = vadd.f32 -0.4999988, %v180_v57 }
  0xd5   :  { %v322_v62 = vand.u32 2147483647, %v321_v58 }
  0xd6   :  { %v189_v61 = vmul.f32 %v188_v37, %v177_v46  ;;  %v182_v63 = vmul.f32 %v181_v43, %v177_v46 }
  0xd7   :  { %v325_v2 = vmul.f32 %v324_v41, %v322_v62 }
  0xd8   :  { %v190_v1 = vadd.f32 1.0, %v189_v61  ;;  %v183_v12 = vadd.f32 1.0, %v182_v63 }
  0xd9   :  { %v326_v13 = vxor.u32 2147483648, %v325_v2 }
  0xda   :  { %v191_v8 = vmul.f32 %v190_v1, %v175_v45  ;;  %v200_v27 = vxor.u32 2147483648, %v183_v12 }
  0xdb   :  { %v327_v9 = vsel %vm206_vm13, %v326_v13, %v325_v2  ;;  %vm678_vm13 = vcmask 523264  }
  0xdc   :  { %v197_v10 = vxor.u32 2147483648, %v191_v8  ;;  %v330_v7 = vsel %vm942_vm12, %v789_v4, %v327_v9  ;;  %v201_v16 = vsel %vm199_vm1, %v200_v27, %v191_v8  ;;  %v510_v20 = vsel %vm508_vm3, %v200_v27, %v191_v8 }
  0xdd   :  { %v332_v17 = vmul.f32 %v330_v7, %v330_v7  ;;  %vm675_vm12 = vcmask 261120  }
  0xde   :  { %v507_v19 = vsel %vm505_vm15, %v183_v12, %v197_v10  ;;  %v198_v11 = vsel %vm196_vm2, %v183_v12, %v197_v10 }
  0xdf   :  { %v511_v29 = vsel %vm504_vm14, %v507_v19, %v510_v20  ;;  %v202_v22 = vsel %vm195_vm0, %v198_v11, %v201_v16  ;;  %v340_v26 = vmul.f32 -0.00019511016, %v332_v17  ;;  %v333_v33 = vmul.f32 -0.001358992, %v332_v17 }
  0xe0   :  { %v512_v30 = vsel %vm192_vm4, nan, %v511_v29  ;;  %v203_v31 = vsel %vm192_vm4, nan, %v202_v22 }
  0xe1   :  { %669 = vrot.lane.b32.xlu0 %v512_v30, %s759_s0  ;;  %v341_v36 = vadd.f32 0.008332121, %v340_v26  ;;  %v334_v59 = vadd.f32 0.041655596, %v333_v33 }
  0xe3   :  { %v342_v60 = vmul.f32 %v341_v36, %v332_v17  ;;  %v335_v38 = vmul.f32 %v334_v59, %v332_v17 }
  0xe5   :  { %v343_v39 = vadd.f32 -0.16666654, %v342_v60  ;;  %v336_v3 = vadd.f32 -0.4999988, %v335_v38 }
  0xe7   :  { %v344_v34 = vmul.f32 %v343_v39, %v332_v17  ;;  %v337_v42 = vmul.f32 %v336_v3, %v332_v17 }
  0xe9   :  { %v345_v45 = vadd.f32 1.0, %v344_v34  ;;  %v338_v46 = vadd.f32 1.0, %v337_v42 }
  0xeb   :  { %v346_v32 = vmul.f32 %v345_v45, %v330_v7  ;;  %v355_v47 = vxor.u32 2147483648, %v338_v46 }
  0xed   :  { %v352_v49 = vxor.u32 2147483648, %v346_v32  ;;  %v356_v50 = vsel %vm354_vm5, %v355_v47, %v346_v32  ;;  %v664_v5 = vsel %vm662_vm9, %v355_v47, %v346_v32 }
  0xef   :  { %v353_v51 = vsel %vm351_vm6, %v338_v46, %v352_v49  ;;  %v661_v52 = vsel %vm659_vm8, %v338_v46, %v352_v49 }
  0xf0   :  { %v357_v53 = vsel %vm350_vm10, %v353_v51, %v356_v50  ;;  %v665_v54 = vsel %vm658_vm7, %v661_v52, %v664_v5 }
  0xf1   :  { %v358_v55 = vsel %vm347_vm11, nan, %v357_v53  ;;  %v666_v56 = vsel %vm347_vm11, nan, %v665_v54 }
  0xf2   :  { %671 = vrot.lane.b32.xlu0 %v666_v56, %s759_s0 }
 0x153   :  { %v670_v25 = vpop.permute.xlu0 %669 }
 0x154   :  { %v676_v40 = vsel %vm675_vm12, %v203_v31, %v670_v25 }
 0x155   :  { %679 = vst.msk [vmem:[#allocation2] sm:$0xff] %vm678_vm13, %v676_v40 }
 0x164   :  { %v672_v4 = vpop.permute.xlu0 %671 }
 0x165   :  { %v677_v28 = vsel %vm675_vm12, %v358_v55, %v672_v4 }
 0x166   :  { %680 = vst.msk [vmem:[#allocation2 + $0x8] sm:$0xff] %vm678_vm13, %v677_v28 }
 0x167   :  { %693 = dma.vmem_to_hbm [thread:$0]  %s686_s15, 256, %s688_s18, [#allocation3], %s761_s19, %s761_s19, %s762_s20  }
 0x168   :  { %750 = dma.done.wait [#allocation3], 256  }
 0x169   :  { %751 = vsyncadd [#allocation3], 4294967040 }
 0x16a   :  { %698 = vsyncpa [#allocation3], 1 }

</bundles_post_ra>
